<compile_context>
chip_gen: v6e
topology: v6e:2x2x1
jax: 0.10.0
libtpu: 0.0.40
codegen_flags: <defaults>
</compile_context>

<pallas_src>
import functools

import jax
import jax.numpy as jnp
from jax import lax
from jax.experimental import pallas as pl
from jax.experimental.pallas import tpu as pltpu


# ---------------------------------------------------------------------------
# Fused kernel: conv3x3+BN+ReLU  ->  AFF (local + global branches + blend).
# ---------------------------------------------------------------------------
def bcsa_fused_kernel(fh_ref, fl_ref, wc_ref, sc_ref, bc_ref,
                      wl1_ref, s1_ref, b1_ref, wl2_ref, s2_ref, b2_ref,
                      wg1_ref, bg1_ref, wg2_ref, bg2_ref,
                      o_ref, col_ref, *, H, W):
    HW = H * W
    c_in = fh_ref.shape[1]

    # ---- 3x3 conv as ONE K=9*C_in matmul over an in-VMEM im2col matrix ----
    # col[tap*C_in + c, h*W + w] = fuse_high[c, h+dy-1, w+dx-1]  (0 outside).
    # Zero-filled scratch handles the vertical (row) border; a lane mask
    # handles the horizontal (column) border wrap of the flattened layout.
    w_lane = lax.broadcasted_iota(jnp.int32, (c_in, HW), 1) % W   # pixel column
    col_ref[...] = jnp.zeros_like(col_ref)
    for dy in range(3):
        for dx in range(3):
            d = (dy - 1) * W + (dx - 1)                 # flat tap offset
            lo, hi = max(0, -d), min(HW, HW - d)        # in-bounds output lanes
            src = fh_ref[0, :, lo + d:hi + d]           # (C_in, hi-lo)
            if dx != 1:                                 # horizontal border mask
                wt = w_lane[:, lo:hi] + (dx - 1)
                src = jnp.where((wt >= 0) & (wt < W), src, 0.0)
            s = dy * 3 + dx
            col_ref[s * c_in:(s + 1) * c_in, lo:hi] = src
    col = col_ref[...].astype(jnp.bfloat16)             # (9*C_in, HW)

    y = jnp.dot(wc_ref[...], col, preferred_element_type=jnp.float32)  # (C, HW)
    x = jnp.maximum(y * sc_ref[...] + bc_ref[...], 0.0)  # folded BN + ReLU

    # ---- AFF ----
    r = fl_ref[0]                                        # (C, HW) f32
    xa = x + r
    xa_bf = xa.astype(jnp.bfloat16)

    # Local branch: 1x1 conv -> BN -> ReLU -> 1x1 conv -> BN (per pixel).
    l1 = jnp.dot(wl1_ref[...], xa_bf, preferred_element_type=jnp.float32)
    l1 = jnp.maximum(l1 * s1_ref[...] + b1_ref[...], 0.0)
    xl = jnp.dot(wl2_ref[...], l1.astype(jnp.bfloat16),
                 preferred_element_type=jnp.float32)
    xl = xl * s2_ref[...] + b2_ref[...]

    # Global branch: avg pool (lane reduce) -> 1x1 conv -> ReLU -> 1x1 conv.
    g = jnp.sum(xa, axis=1, keepdims=True) * (1.0 / HW)              # (C, 1)
    g1 = jnp.maximum(
        jnp.dot(wg1_ref[...], g, preferred_element_type=jnp.float32)
        + bg1_ref[...], 0.0)                                         # (Ci, 1)
    xg = jnp.dot(wg2_ref[...], g1, preferred_element_type=jnp.float32) \
        + bg2_ref[...]                                               # (C, 1)

    wei = jax.nn.sigmoid(xl + xg)
    # 2*x*wei + 2*r*(1-wei) == 2*(r + wei*(x - r))
    o_ref[0] = (2.0 * (r + wei * (x - r))).astype(o_ref.dtype)


# ---------------------------------------------------------------------------
# BCSA forward wrapper.
# ---------------------------------------------------------------------------
def bcsa_forward(fuse_high, fuse_low, p, eps=1e-5):
    B, C_in, H, W = fuse_high.shape
    C = p["conv_w"].shape[0]
    Ci = p["wl1"].shape[0]
    HW = H * W

    def fold(gamma, beta, mean, var, bias=None):
        scale = gamma / jnp.sqrt(var + eps)
        shift = beta - mean * scale
        if bias is not None:
            shift = shift + scale * bias       # fold preceding conv bias into BN
        return scale, shift

    sc, bc = fold(p["bn_gamma"], p["bn_beta"], p["bn_mean"], p["bn_var"])
    s1, b1 = fold(p["bn1_gamma"], p["bn1_beta"], p["bn1_mean"], p["bn1_var"], p["bl1"])
    s2, b2 = fold(p["bn2_gamma"], p["bn2_beta"], p["bn2_mean"], p["bn2_var"], p["bl2"])

    # 3x3 weight reshaped for the im2col matmul: column index = (dy*3+dx)*C_in + c.
    w_conv = jnp.transpose(p["conv_w"], (0, 2, 3, 1)).reshape(C, 9 * C_in)
    w_conv = w_conv.astype(jnp.bfloat16)
    wl1 = p["wl1"].astype(jnp.bfloat16)
    wl2 = p["wl2"].astype(jnp.bfloat16)

    fh = fuse_high.reshape(B, C_in, HW)       # free reshape (NCHW contiguous)
    fl = fuse_low.reshape(B, C, HW)

    full = lambda b: (0, 0)
    out = pl.pallas_call(
        functools.partial(bcsa_fused_kernel, H=H, W=W),
        out_shape=jax.ShapeDtypeStruct((B, C, HW), fuse_low.dtype),
        grid_spec=pltpu.PrefetchScalarGridSpec(
            num_scalar_prefetch=0,
            grid=(B,),
            in_specs=[
                pl.BlockSpec((1, C_in, HW), lambda b: (b, 0, 0)),
                pl.BlockSpec((1, C, HW), lambda b: (b, 0, 0)),
                pl.BlockSpec((C, 9 * C_in), full),
                pl.BlockSpec((C, 1), full),
                pl.BlockSpec((C, 1), full),
                pl.BlockSpec((Ci, C), full),
                pl.BlockSpec((Ci, 1), full),
                pl.BlockSpec((Ci, 1), full),
                pl.BlockSpec((C, Ci), full),
                pl.BlockSpec((C, 1), full),
                pl.BlockSpec((C, 1), full),
                pl.BlockSpec((Ci, C), full),
                pl.BlockSpec((Ci, 1), full),
                pl.BlockSpec((C, Ci), full),
                pl.BlockSpec((C, 1), full),
            ],
            out_specs=pl.BlockSpec((1, C, HW), lambda b: (b, 0, 0)),
            scratch_shapes=[pltpu.VMEM((9 * C_in, HW), jnp.float32)],
        ),
        compiler_params=pltpu.CompilerParams(
            dimension_semantics=("parallel",),
            vmem_limit_bytes=32 * 1024 * 1024,
        ),
    )(fh, fl, w_conv,
      sc.reshape(C, 1), bc.reshape(C, 1),
      wl1, s1.reshape(Ci, 1), b1.reshape(Ci, 1),
      wl2, s2.reshape(C, 1), b2.reshape(C, 1),
      p["wg1"], p["bg1"].reshape(Ci, 1),
      p["wg2"], p["bg2"].reshape(C, 1))

    return out.reshape(B, C, H, W)


# ---------------------------------------------------------------------------
# Pure-JAX reference of the PyTorch forward (inference-mode BatchNorm, f32).
# ---------------------------------------------------------------------------
def _reference(fuse_high, fuse_low, p, eps=1e-5):
    hp = lax.Precision.HIGHEST

    def bn(y, gamma, beta, mean, var):
        inv = gamma / jnp.sqrt(var + eps)
        return (y - mean[None, :, None, None]) * inv[None, :, None, None] \
            + beta[None, :, None, None]

    y = lax.conv_general_dilated(
        fuse_high, p["conv_w"], window_strides=(1, 1), padding="SAME",
        dimension_numbers=("NCHW", "OIHW", "NCHW"), precision=hp)
    x = jnp.maximum(bn(y, p["bn_gamma"], p["bn_beta"], p["bn_mean"], p["bn_var"]), 0.0)

    xa = x + fuse_low
    # local branch
    l1 = jnp.einsum("oi,bihw->bohw", p["wl1"], xa, precision=hp) \
        + p["bl1"][None, :, None, None]
    l1 = jnp.maximum(bn(l1, p["bn1_gamma"], p["bn1_beta"], p["bn1_mean"], p["bn1_var"]), 0.0)
    xl = jnp.einsum("oi,bihw->bohw", p["wl2"], l1, precision=hp) \
        + p["bl2"][None, :, None, None]
    xl = bn(xl, p["bn2_gamma"], p["bn2_beta"], p["bn2_mean"], p["bn2_var"])
    # global branch
    g = jnp.mean(xa, axis=(2, 3))                                     # (B, C)
    g1 = jnp.maximum(jnp.einsum("bi,oi->bo", g, p["wg1"], precision=hp) + p["bg1"], 0.0)
    xg = jnp.einsum("bi,oi->bo", g1, p["wg2"], precision=hp) + p["bg2"]

    wei = jax.nn.sigmoid(xl + xg[:, :, None, None])
    return 2.0 * x * wei + 2.0 * fuse_low * (1.0 - wei)


def make_params(key, in_ch, out_ch, r=4):
    ci = out_ch // r
    ks = jax.random.split(key, 24)
    n = lambda k, shape, s=0.1: s * jax.random.normal(k, shape, dtype=jnp.float32)
    u = lambda k, shape: 0.5 + jax.random.uniform(k, shape, dtype=jnp.float32)
    return {
        # conv3x3_bn_relu
        "conv_w": n(ks[0], (out_ch, in_ch, 3, 3), 0.1),
        "bn_gamma": 1.0 + n(ks[1], (out_ch,)), "bn_beta": n(ks[2], (out_ch,)),
        "bn_mean": n(ks[3], (out_ch,)), "bn_var": u(ks[4], (out_ch,)),
        # AFF local branch
        "wl1": n(ks[5], (ci, out_ch), 0.2), "bl1": n(ks[6], (ci,)),
        "bn1_gamma": 1.0 + n(ks[7], (ci,)), "bn1_beta": n(ks[8], (ci,)),
        "bn1_mean": n(ks[9], (ci,)), "bn1_var": u(ks[10], (ci,)),
        "wl2": n(ks[11], (out_ch, ci), 0.2), "bl2": n(ks[12], (out_ch,)),
        "bn2_gamma": 1.0 + n(ks[13], (out_ch,)), "bn2_beta": n(ks[14], (out_ch,)),
        "bn2_mean": n(ks[15], (out_ch,)), "bn2_var": u(ks[16], (out_ch,)),
        # AFF global branch
        "wg1": n(ks[17], (ci, out_ch), 0.2), "bg1": n(ks[18], (ci,)),
        "wg2": n(ks[19], (out_ch, ci), 0.2), "bg2": n(ks[20], (out_ch,)),
    }


if __name__ == "__main__":
    B, IN_CH, OUT_CH, H, W = 2, 8, 16, 16, 16

    key = jax.random.PRNGKey(0)
    k_fh, k_fl, k_p = jax.random.split(key, 3)
    fuse_high = jax.random.normal(k_fh, (B, IN_CH, H, W), dtype=jnp.float32)
    fuse_low = jax.random.normal(k_fl, (B, OUT_CH, H, W), dtype=jnp.float32)
    params = make_params(k_p, IN_CH, OUT_CH)

    out = bcsa_forward(fuse_high, fuse_low, params)
    out = jax.block_until_ready(out)

    ref = _reference(fuse_high, fuse_low, params)
    assert out.shape == (B, OUT_CH, H, W), out.shape
    max_err = float(jnp.max(jnp.abs(out - ref)))
    # bf16 MXU operands with f32 accumulation vs. an f32 reference.
    assert jnp.allclose(out, ref, atol=5e-2, rtol=5e-2), f"mismatch vs reference: {max_err}"

    print("KERNEL_OK")
</pallas_src>

<mosaic_0001>
module attributes {stable_mosaic.version = 11 : i64} {
  func.func @bcsa_fused_kernel(%arg0: i32, %arg1: memref<1x8x256xf32, #tpu.memory_space<vmem>>, %arg2: memref<1x16x256xf32, #tpu.memory_space<vmem>>, %arg3: memref<16x72xbf16, #tpu.memory_space<vmem>>, %arg4: memref<16x1xf32, #tpu.memory_space<vmem>>, %arg5: memref<16x1xf32, #tpu.memory_space<vmem>>, %arg6: memref<4x16xbf16, #tpu.memory_space<vmem>>, %arg7: memref<4x1xf32, #tpu.memory_space<vmem>>, %arg8: memref<4x1xf32, #tpu.memory_space<vmem>>, %arg9: memref<16x4xbf16, #tpu.memory_space<vmem>>, %arg10: memref<16x1xf32, #tpu.memory_space<vmem>>, %arg11: memref<16x1xf32, #tpu.memory_space<vmem>>, %arg12: memref<4x16xf32, #tpu.memory_space<vmem>>, %arg13: memref<4x1xf32, #tpu.memory_space<vmem>>, %arg14: memref<16x4xf32, #tpu.memory_space<vmem>>, %arg15: memref<16x1xf32, #tpu.memory_space<vmem>>, %arg16: memref<1x16x256xf32, #tpu.memory_space<vmem>>, %arg17: memref<72x256xf32, #tpu.memory_space<vmem>>) attributes {dimension_semantics = [#tpu.dimension_semantics<parallel>], iteration_bounds = array<i64: 2>, scalar_prefetch = 0 : i64, scratch_operands = 1 : i64, tpu.core_type = #tpu.core_type<tc>, window_params = [{transform_indices = @transform_0, window_bounds = array<i64: 1, 8, 256>}, {transform_indices = @transform_1, window_bounds = array<i64: 1, 16, 256>}, {pipeline_mode = #tpu.pipeline_mode<synchronous>, transform_indices = @transform_2, window_bounds = array<i64: 16, 72>}, {pipeline_mode = #tpu.pipeline_mode<synchronous>, transform_indices = @transform_3, window_bounds = array<i64: 16, 1>}, {pipeline_mode = #tpu.pipeline_mode<synchronous>, transform_indices = @transform_4, window_bounds = array<i64: 16, 1>}, {pipeline_mode = #tpu.pipeline_mode<synchronous>, transform_indices = @transform_5, window_bounds = array<i64: 4, 16>}, {pipeline_mode = #tpu.pipeline_mode<synchronous>, transform_indices = @transform_6, window_bounds = array<i64: 4, 1>}, {pipeline_mode = #tpu.pipeline_mode<synchronous>, transform_indices = @transform_7, window_bounds = array<i64: 4, 1>}, {pipeline_mode = #tpu.pipeline_mode<synchronous>, transform_indices = @transform_8, window_bounds = array<i64: 16, 4>}, {pipeline_mode = #tpu.pipeline_mode<synchronous>, transform_indices = @transform_9, window_bounds = array<i64: 16, 1>}, {pipeline_mode = #tpu.pipeline_mode<synchronous>, transform_indices = @transform_10, window_bounds = array<i64: 16, 1>}, {pipeline_mode = #tpu.pipeline_mode<synchronous>, transform_indices = @transform_11, window_bounds = array<i64: 4, 16>}, {pipeline_mode = #tpu.pipeline_mode<synchronous>, transform_indices = @transform_12, window_bounds = array<i64: 4, 1>}, {pipeline_mode = #tpu.pipeline_mode<synchronous>, transform_indices = @transform_13, window_bounds = array<i64: 16, 4>}, {pipeline_mode = #tpu.pipeline_mode<synchronous>, transform_indices = @transform_14, window_bounds = array<i64: 16, 1>}, {transform_indices = @transform_15, window_bounds = array<i64: 1, 16, 256>}]} {
    %0 = tpu.iota {dimensions = array<i32: 1>} : vector<8x256xi32>
    %c16_i32 = arith.constant 16 : i32
    %c0_i32 = arith.constant 0 : i32
    %1 = arith.cmpi eq, %c16_i32, %c0_i32 : i32
    %c1_i32 = arith.constant 1 : i32
    %2 = arith.select %1, %c1_i32, %c16_i32 : i32
    %3 = vector.broadcast %2 : i32 to vector<8x256xi32>
    %4 = arith.remsi %0, %3 : vector<8x256xi32>
    %c0_i32_0 = arith.constant 0 : i32
    %5 = vector.broadcast %c0_i32_0 : i32 to vector<8x256xi32>
    %6 = arith.cmpi ne, %4, %5 : vector<8x256xi32>
    %c0_i32_1 = arith.constant 0 : i32
    %7 = vector.broadcast %c0_i32_1 : i32 to vector<8x256xi32>
    %8 = arith.cmpi slt, %4, %7 : vector<8x256xi32>
    %c0_i32_2 = arith.constant 0 : i32
    %9 = arith.cmpi slt, %2, %c0_i32_2 : i32
    %10 = vector.broadcast %9 : i1 to vector<8x256xi1>
    %11 = vector.broadcast %10 : vector<8x256xi1> to vector<8x256xi1>
    %12 = arith.xori %8, %11 : vector<8x256xi1>
    %13 = arith.andi %12, %6 : vector<8x256xi1>
    %14 = vector.broadcast %2 : i32 to vector<8x256xi32>
    %15 = arith.addi %4, %14 : vector<8x256xi32>
    %16 = arith.select %13, %15, %4 : vector<8x256xi1>, vector<8x256xi32>
    %cst = arith.constant 0.000000e+00 : f32
    %17 = vector.broadcast %cst : f32 to vector<72x256xf32>
    %c0 = arith.constant 0 : index
    %c0_3 = arith.constant 0 : index
    %18 = vector.load %arg17[%c0, %c0_3] : memref<72x256xf32, #tpu.memory_space<vmem>>, vector<72x256xf32>
    tpu.vector_store %arg17[%c0, %c0_3], %17 {strides = array<i32>} : memref<72x256xf32, #tpu.memory_space<vmem>>, vector<72x256xf32>,
    %c0_4 = arith.constant 0 : index
    %c0_5 = arith.constant 0 : index
    %c0_6 = arith.constant 0 : index
    %19 = vector.load %arg1[%c0_4, %c0_5, %c0_6] : memref<1x8x256xf32, #tpu.memory_space<vmem>>, vector<1x8x239xf32>
    %20 = vector.shape_cast %19 : vector<1x8x239xf32> to vector<8x239xf32>
    %21 = vector.extract_strided_slice %16 {offsets = [0, 17], sizes = [8, 239], strides = [1, 1]} : vector<8x256xi32> to vector<8x239xi32>
    %c-1_i32 = arith.constant -1 : i32
    %22 = vector.broadcast %c-1_i32 : i32 to vector<8x239xi32>
    %23 = arith.addi %21, %22 : vector<8x239xi32>
    %c0_i32_7 = arith.constant 0 : i32
    %24 = vector.broadcast %c0_i32_7 : i32 to vector<8x239xi32>
    %25 = arith.cmpi sge, %23, %24 : vector<8x239xi32>
    %c16_i32_8 = arith.constant 16 : i32
    %26 = vector.broadcast %c16_i32_8 : i32 to vector<8x239xi32>
    %27 = arith.cmpi slt, %23, %26 : vector<8x239xi32>
    %28 = arith.andi %25, %27 : vector<8x239xi1>
    %cst_9 = arith.constant 0.000000e+00 : f32
    %29 = vector.broadcast %cst_9 : f32 to vector<8x239xf32>
    %30 = arith.select %28, %20, %29 : vector<8x239xi1>, vector<8x239xf32>
    %c0_10 = arith.constant 0 : index
    %c17 = arith.constant 17 : index
    %31 = vector.load %arg17[%c0_10, %c17] : memref<72x256xf32, #tpu.memory_space<vmem>>, vector<8x239xf32>
    tpu.vector_store %arg17[%c0_10, %c17], %30 {strides = array<i32>} : memref<72x256xf32, #tpu.memory_space<vmem>>, vector<8x239xf32>,
    %c0_11 = arith.constant 0 : index
    %c0_12 = arith.constant 0 : index
    %c0_13 = arith.constant 0 : index
    %32 = vector.load %arg1[%c0_11, %c0_12, %c0_13] : memref<1x8x256xf32, #tpu.memory_space<vmem>>, vector<1x8x240xf32>
    %33 = vector.shape_cast %32 : vector<1x8x240xf32> to vector<8x240xf32>
    %c8 = arith.constant 8 : index
    %c16 = arith.constant 16 : index
    %34 = vector.load %arg17[%c8, %c16] : memref<72x256xf32, #tpu.memory_space<vmem>>, vector<8x240xf32>
    tpu.vector_store %arg17[%c8, %c16], %33 {strides = array<i32>} : memref<72x256xf32, #tpu.memory_space<vmem>>, vector<8x240xf32>,
    %c0_14 = arith.constant 0 : index
    %c0_15 = arith.constant 0 : index
    %c0_16 = arith.constant 0 : index
    %35 = vector.load %arg1[%c0_14, %c0_15, %c0_16] : memref<1x8x256xf32, #tpu.memory_space<vmem>>, vector<1x8x241xf32>
    %36 = vector.shape_cast %35 : vector<1x8x241xf32> to vector<8x241xf32>
    %37 = vector.extract_strided_slice %16 {offsets = [0, 15], sizes = [8, 241], strides = [1, 1]} : vector<8x256xi32> to vector<8x241xi32>
    %c1_i32_17 = arith.constant 1 : i32
    %38 = vector.broadcast %c1_i32_17 : i32 to vector<8x241xi32>
    %39 = arith.addi %37, %38 : vector<8x241xi32>
    %c0_i32_18 = arith.constant 0 : i32
    %40 = vector.broadcast %c0_i32_18 : i32 to vector<8x241xi32>
    %41 = arith.cmpi sge, %39, %40 : vector<8x241xi32>
    %c16_i32_19 = arith.constant 16 : i32
    %42 = vector.broadcast %c16_i32_19 : i32 to vector<8x241xi32>
    %43 = arith.cmpi slt, %39, %42 : vector<8x241xi32>
    %44 = arith.andi %41, %43 : vector<8x241xi1>
    %cst_20 = arith.constant 0.000000e+00 : f32
    %45 = vector.broadcast %cst_20 : f32 to vector<8x241xf32>
    %46 = arith.select %44, %36, %45 : vector<8x241xi1>, vector<8x241xf32>
    %c16_21 = arith.constant 16 : index
    %c15 = arith.constant 15 : index
    %47 = vector.load %arg17[%c16_21, %c15] : memref<72x256xf32, #tpu.memory_space<vmem>>, vector<8x241xf32>
    tpu.vector_store %arg17[%c16_21, %c15], %46 {strides = array<i32>} : memref<72x256xf32, #tpu.memory_space<vmem>>, vector<8x241xf32>,
    %c0_22 = arith.constant 0 : index
    %c0_23 = arith.constant 0 : index
    %c0_24 = arith.constant 0 : index
    %48 = vector.load %arg1[%c0_22, %c0_23, %c0_24] : memref<1x8x256xf32, #tpu.memory_space<vmem>>, vector<1x8x255xf32>
    %49 = vector.shape_cast %48 : vector<1x8x255xf32> to vector<8x255xf32>
    %50 = vector.extract_strided_slice %16 {offsets = [0, 1], sizes = [8, 255], strides = [1, 1]} : vector<8x256xi32> to vector<8x255xi32>
    %c-1_i32_25 = arith.constant -1 : i32
    %51 = vector.broadcast %c-1_i32_25 : i32 to vector<8x255xi32>
    %52 = arith.addi %50, %51 : vector<8x255xi32>
    %c0_i32_26 = arith.constant 0 : i32
    %53 = vector.broadcast %c0_i32_26 : i32 to vector<8x255xi32>
    %54 = arith.cmpi sge, %52, %53 : vector<8x255xi32>
    %c16_i32_27 = arith.constant 16 : i32
    %55 = vector.broadcast %c16_i32_27 : i32 to vector<8x255xi32>
    %56 = arith.cmpi slt, %52, %55 : vector<8x255xi32>
    %57 = arith.andi %54, %56 : vector<8x255xi1>
    %cst_28 = arith.constant 0.000000e+00 : f32
    %58 = vector.broadcast %cst_28 : f32 to vector<8x255xf32>
    %59 = arith.select %57, %49, %58 : vector<8x255xi1>, vector<8x255xf32>
    %c24 = arith.constant 24 : index
    %c1 = arith.constant 1 : index
    %60 = vector.load %arg17[%c24, %c1] : memref<72x256xf32, #tpu.memory_space<vmem>>, vector<8x255xf32>
    tpu.vector_store %arg17[%c24, %c1], %59 {strides = array<i32>} : memref<72x256xf32, #tpu.memory_space<vmem>>, vector<8x255xf32>,
    %c0_29 = arith.constant 0 : index
    %c0_30 = arith.constant 0 : index
    %c0_31 = arith.constant 0 : index
    %61 = vector.load %arg1[%c0_29, %c0_30, %c0_31] : memref<1x8x256xf32, #tpu.memory_space<vmem>>, vector<1x8x256xf32>
    %62 = vector.shape_cast %61 : vector<1x8x256xf32> to vector<8x256xf32>
    %c32 = arith.constant 32 : index
    %c0_32 = arith.constant 0 : index
    %63 = vector.load %arg17[%c32, %c0_32] : memref<72x256xf32, #tpu.memory_space<vmem>>, vector<8x256xf32>
    tpu.vector_store %arg17[%c32, %c0_32], %62 {strides = array<i32>} : memref<72x256xf32, #tpu.memory_space<vmem>>, vector<8x256xf32>,
    %c0_33 = arith.constant 0 : index
    %c0_34 = arith.constant 0 : index
    %c1_35 = arith.constant 1 : index
    %64 = vector.load %arg1[%c0_33, %c0_34, %c1_35] : memref<1x8x256xf32, #tpu.memory_space<vmem>>, vector<1x8x255xf32>
    %65 = vector.shape_cast %64 : vector<1x8x255xf32> to vector<8x255xf32>
    %66 = vector.extract_strided_slice %16 {offsets = [0, 0], sizes = [8, 255], strides = [1, 1]} : vector<8x256xi32> to vector<8x255xi32>
    %c1_i32_36 = arith.constant 1 : i32
    %67 = vector.broadcast %c1_i32_36 : i32 to vector<8x255xi32>
    %68 = arith.addi %66, %67 : vector<8x255xi32>
    %c0_i32_37 = arith.constant 0 : i32
    %69 = vector.broadcast %c0_i32_37 : i32 to vector<8x255xi32>
    %70 = arith.cmpi sge, %68, %69 : vector<8x255xi32>
    %c16_i32_38 = arith.constant 16 : i32
    %71 = vector.broadcast %c16_i32_38 : i32 to vector<8x255xi32>
    %72 = arith.cmpi slt, %68, %71 : vector<8x255xi32>
    %73 = arith.andi %70, %72 : vector<8x255xi1>
    %cst_39 = arith.constant 0.000000e+00 : f32
    %74 = vector.broadcast %cst_39 : f32 to vector<8x255xf32>
    %75 = arith.select %73, %65, %74 : vector<8x255xi1>, vector<8x255xf32>
    %c40 = arith.constant 40 : index
    %c0_40 = arith.constant 0 : index
    %76 = vector.load %arg17[%c40, %c0_40] : memref<72x256xf32, #tpu.memory_space<vmem>>, vector<8x255xf32>
    tpu.vector_store %arg17[%c40, %c0_40], %75 {strides = array<i32>} : memref<72x256xf32, #tpu.memory_space<vmem>>, vector<8x255xf32>,
    %c0_41 = arith.constant 0 : index
    %c0_42 = arith.constant 0 : index
    %c15_43 = arith.constant 15 : index
    %77 = vector.load %arg1[%c0_41, %c0_42, %c15_43] : memref<1x8x256xf32, #tpu.memory_space<vmem>>, vector<1x8x241xf32>
    %78 = vector.shape_cast %77 : vector<1x8x241xf32> to vector<8x241xf32>
    %79 = vector.extract_strided_slice %16 {offsets = [0, 0], sizes = [8, 241], strides = [1, 1]} : vector<8x256xi32> to vector<8x241xi32>
    %c-1_i32_44 = arith.constant -1 : i32
    %80 = vector.broadcast %c-1_i32_44 : i32 to vector<8x241xi32>
    %81 = arith.addi %79, %80 : vector<8x241xi32>
    %c0_i32_45 = arith.constant 0 : i32
    %82 = vector.broadcast %c0_i32_45 : i32 to vector<8x241xi32>
    %83 = arith.cmpi sge, %81, %82 : vector<8x241xi32>
    %c16_i32_46 = arith.constant 16 : i32
    %84 = vector.broadcast %c16_i32_46 : i32 to vector<8x241xi32>
    %85 = arith.cmpi slt, %81, %84 : vector<8x241xi32>
    %86 = arith.andi %83, %85 : vector<8x241xi1>
    %cst_47 = arith.constant 0.000000e+00 : f32
    %87 = vector.broadcast %cst_47 : f32 to vector<8x241xf32>
    %88 = arith.select %86, %78, %87 : vector<8x241xi1>, vector<8x241xf32>
    %c48 = arith.constant 48 : index
    %c0_48 = arith.constant 0 : index
    %89 = vector.load %arg17[%c48, %c0_48] : memref<72x256xf32, #tpu.memory_space<vmem>>, vector<8x241xf32>
    tpu.vector_store %arg17[%c48, %c0_48], %88 {strides = array<i32>} : memref<72x256xf32, #tpu.memory_space<vmem>>, vector<8x241xf32>,
    %c0_49 = arith.constant 0 : index
    %c0_50 = arith.constant 0 : index
    %c16_51 = arith.constant 16 : index
    %90 = vector.load %arg1[%c0_49, %c0_50, %c16_51] : memref<1x8x256xf32, #tpu.memory_space<vmem>>, vector<1x8x240xf32>
    %91 = vector.shape_cast %90 : vector<1x8x240xf32> to vector<8x240xf32>
    %c56 = arith.constant 56 : index
    %c0_52 = arith.constant 0 : index
    %92 = vector.load %arg17[%c56, %c0_52] : memref<72x256xf32, #tpu.memory_space<vmem>>, vector<8x240xf32>
    tpu.vector_store %arg17[%c56, %c0_52], %91 {strides = array<i32>} : memref<72x256xf32, #tpu.memory_space<vmem>>, vector<8x240xf32>,
    %c0_53 = arith.constant 0 : index
    %c0_54 = arith.constant 0 : index
    %c17_55 = arith.constant 17 : index
    %93 = vector.load %arg1[%c0_53, %c0_54, %c17_55] : memref<1x8x256xf32, #tpu.memory_space<vmem>>, vector<1x8x239xf32>
    %94 = vector.shape_cast %93 : vector<1x8x239xf32> to vector<8x239xf32>
    %95 = vector.extract_strided_slice %16 {offsets = [0, 0], sizes = [8, 239], strides = [1, 1]} : vector<8x256xi32> to vector<8x239xi32>
    %c1_i32_56 = arith.constant 1 : i32
    %96 = vector.broadcast %c1_i32_56 : i32 to vector<8x239xi32>
    %97 = arith.addi %95, %96 : vector<8x239xi32>
    %c0_i32_57 = arith.constant 0 : i32
    %98 = vector.broadcast %c0_i32_57 : i32 to vector<8x239xi32>
    %99 = arith.cmpi sge, %97, %98 : vector<8x239xi32>
    %c16_i32_58 = arith.constant 16 : i32
    %100 = vector.broadcast %c16_i32_58 : i32 to vector<8x239xi32>
    %101 = arith.cmpi slt, %97, %100 : vector<8x239xi32>
    %102 = arith.andi %99, %101 : vector<8x239xi1>
    %cst_59 = arith.constant 0.000000e+00 : f32
    %103 = vector.broadcast %cst_59 : f32 to vector<8x239xf32>
    %104 = arith.select %102, %94, %103 : vector<8x239xi1>, vector<8x239xf32>
    %c64 = arith.constant 64 : index
    %c0_60 = arith.constant 0 : index
    %105 = vector.load %arg17[%c64, %c0_60] : memref<72x256xf32, #tpu.memory_space<vmem>>, vector<8x239xf32>
    tpu.vector_store %arg17[%c64, %c0_60], %104 {strides = array<i32>} : memref<72x256xf32, #tpu.memory_space<vmem>>, vector<8x239xf32>,
    %c0_61 = arith.constant 0 : index
    %c0_62 = arith.constant 0 : index
    %106 = vector.load %arg17[%c0_61, %c0_62] : memref<72x256xf32, #tpu.memory_space<vmem>>, vector<72x256xf32>
    %107 = arith.truncf %106 : vector<72x256xf32> to vector<72x256xbf16>
    %c0_63 = arith.constant 0 : index
    %c0_64 = arith.constant 0 : index
    %108 = vector.load %arg3[%c0_63, %c0_64] : memref<16x72xbf16, #tpu.memory_space<vmem>>, vector<16x72xbf16>
    %cst_65 = arith.constant dense<0.000000e+00> : vector<16x256xf32>
    %109 = tpu.matmul %108, %107, %cst_65 {dimension_numbers = #tpu.dot_dimension_numbers<[1], [0], [0], [1], [0, 0, 1, 1], [], []>} : vector<16x72xbf16>, vector<72x256xbf16>, vector<16x256xf32> -> vector<16x256xf32>
    %c0_66 = arith.constant 0 : index
    %c0_67 = arith.constant 0 : index
    %110 = vector.load %arg4[%c0_66, %c0_67] : memref<16x1xf32, #tpu.memory_space<vmem>>, vector<16x1xf32>
    %111 = vector.broadcast %110 : vector<16x1xf32> to vector<16x256xf32>
    %112 = arith.mulf %109, %111 : vector<16x256xf32>
    %c0_68 = arith.constant 0 : index
    %c0_69 = arith.constant 0 : index
    %113 = vector.load %arg5[%c0_68, %c0_69] : memref<16x1xf32, #tpu.memory_space<vmem>>, vector<16x1xf32>
    %114 = vector.broadcast %113 : vector<16x1xf32> to vector<16x256xf32>
    %115 = arith.addf %112, %114 : vector<16x256xf32>
    %cst_70 = arith.constant 0.000000e+00 : f32
    %116 = vector.broadcast %cst_70 : f32 to vector<16x256xf32>
    %117 = arith.maximumf %115, %116 : vector<16x256xf32>
    %c0_71 = arith.constant 0 : index
    %c0_72 = arith.constant 0 : index
    %c0_73 = arith.constant 0 : index
    %118 = vector.load %arg2[%c0_71, %c0_72, %c0_73] : memref<1x16x256xf32, #tpu.memory_space<vmem>>, vector<1x16x256xf32>
    %119 = vector.shape_cast %118 : vector<1x16x256xf32> to vector<16x256xf32>
    %120 = arith.addf %117, %119 : vector<16x256xf32>
    %121 = arith.truncf %120 : vector<16x256xf32> to vector<16x256xbf16>
    %c0_74 = arith.constant 0 : index
    %c0_75 = arith.constant 0 : index
    %122 = vector.load %arg6[%c0_74, %c0_75] : memref<4x16xbf16, #tpu.memory_space<vmem>>, vector<4x16xbf16>
    %cst_76 = arith.constant dense<0.000000e+00> : vector<4x256xf32>
    %123 = tpu.matmul %122, %121, %cst_76 {dimension_numbers = #tpu.dot_dimension_numbers<[1], [0], [0], [1], [0, 0, 1, 1], [], []>} : vector<4x16xbf16>, vector<16x256xbf16>, vector<4x256xf32> -> vector<4x256xf32>
    %c0_77 = arith.constant 0 : index
    %c0_78 = arith.constant 0 : index
    %124 = vector.load %arg7[%c0_77, %c0_78] : memref<4x1xf32, #tpu.memory_space<vmem>>, vector<4x1xf32>
    %125 = vector.broadcast %124 : vector<4x1xf32> to vector<4x256xf32>
    %126 = arith.mulf %123, %125 : vector<4x256xf32>
    %c0_79 = arith.constant 0 : index
    %c0_80 = arith.constant 0 : index
    %127 = vector.load %arg8[%c0_79, %c0_80] : memref<4x1xf32, #tpu.memory_space<vmem>>, vector<4x1xf32>
    %128 = vector.broadcast %127 : vector<4x1xf32> to vector<4x256xf32>
    %129 = arith.addf %126, %128 : vector<4x256xf32>
    %cst_81 = arith.constant 0.000000e+00 : f32
    %130 = vector.broadcast %cst_81 : f32 to vector<4x256xf32>
    %131 = arith.maximumf %129, %130 : vector<4x256xf32>
    %c0_82 = arith.constant 0 : index
    %c0_83 = arith.constant 0 : index
    %132 = vector.load %arg9[%c0_82, %c0_83] : memref<16x4xbf16, #tpu.memory_space<vmem>>, vector<16x4xbf16>
    %133 = arith.truncf %131 : vector<4x256xf32> to vector<4x256xbf16>
    %cst_84 = arith.constant dense<0.000000e+00> : vector<16x256xf32>
    %134 = tpu.matmul %132, %133, %cst_84 {dimension_numbers = #tpu.dot_dimension_numbers<[1], [0], [0], [1], [0, 0, 1, 1], [], []>} : vector<16x4xbf16>, vector<4x256xbf16>, vector<16x256xf32> -> vector<16x256xf32>
    %c0_85 = arith.constant 0 : index
    %c0_86 = arith.constant 0 : index
    %135 = vector.load %arg10[%c0_85, %c0_86] : memref<16x1xf32, #tpu.memory_space<vmem>>, vector<16x1xf32>
    %136 = vector.broadcast %135 : vector<16x1xf32> to vector<16x256xf32>
    %137 = arith.mulf %134, %136 : vector<16x256xf32>
    %c0_87 = arith.constant 0 : index
    %c0_88 = arith.constant 0 : index
    %138 = vector.load %arg11[%c0_87, %c0_88] : memref<16x1xf32, #tpu.memory_space<vmem>>, vector<16x1xf32>
    %139 = vector.broadcast %138 : vector<16x1xf32> to vector<16x256xf32>
    %140 = arith.addf %137, %139 : vector<16x256xf32>
    %cst_89 = arith.constant dense<0.000000e+00> : vector<16xf32>
    %141 = vector.multi_reduction <add>, %120, %cst_89 [1] : vector<16x256xf32> to vector<16xf32>
    %142 = vector.shape_cast %141 : vector<16xf32> to vector<16x1xf32>
    %cst_90 = arith.constant 3.906250e-03 : f32
    %143 = vector.broadcast %cst_90 : f32 to vector<16x1xf32>
    %144 = arith.mulf %142, %143 : vector<16x1xf32>
    %c0_91 = arith.constant 0 : index
    %c0_92 = arith.constant 0 : index
    %145 = vector.load %arg12[%c0_91, %c0_92] : memref<4x16xf32, #tpu.memory_space<vmem>>, vector<4x16xf32>
    %cst_93 = arith.constant dense<0.000000e+00> : vector<4x1xf32>
    %146 = tpu.matmul %145, %144, %cst_93 {dimension_numbers = #tpu.dot_dimension_numbers<[1], [0], [0], [1], [0, 0, 1, 1], [], []>} : vector<4x16xf32>, vector<16x1xf32>, vector<4x1xf32> -> vector<4x1xf32>
    %c0_94 = arith.constant 0 : index
    %c0_95 = arith.constant 0 : index
    %147 = vector.load %arg13[%c0_94, %c0_95] : memref<4x1xf32, #tpu.memory_space<vmem>>, vector<4x1xf32>
    %148 = arith.addf %146, %147 : vector<4x1xf32>
    %cst_96 = arith.constant 0.000000e+00 : f32
    %149 = vector.broadcast %cst_96 : f32 to vector<4x1xf32>
    %150 = arith.maximumf %148, %149 : vector<4x1xf32>
    %c0_97 = arith.constant 0 : index
    %c0_98 = arith.constant 0 : index
    %151 = vector.load %arg14[%c0_97, %c0_98] : memref<16x4xf32, #tpu.memory_space<vmem>>, vector<16x4xf32>
    %cst_99 = arith.constant dense<0.000000e+00> : vector<16x1xf32>
    %152 = tpu.matmul %151, %150, %cst_99 {dimension_numbers = #tpu.dot_dimension_numbers<[1], [0], [0], [1], [0, 0, 1, 1], [], []>} : vector<16x4xf32>, vector<4x1xf32>, vector<16x1xf32> -> vector<16x1xf32>
    %c0_100 = arith.constant 0 : index
    %c0_101 = arith.constant 0 : index
    %153 = vector.load %arg15[%c0_100, %c0_101] : memref<16x1xf32, #tpu.memory_space<vmem>>, vector<16x1xf32>
    %154 = arith.addf %152, %153 : vector<16x1xf32>
    %155 = vector.broadcast %154 : vector<16x1xf32> to vector<16x256xf32>
    %156 = arith.addf %140, %155 : vector<16x256xf32>
    %157 = arith.negf %156 : vector<16x256xf32>
    %158 = math.exp %157 : vector<16x256xf32>
    %cst_102 = arith.constant 1.000000e+00 : f32
    %159 = vector.broadcast %cst_102 : f32 to vector<16x256xf32>
    %160 = arith.addf %159, %158 : vector<16x256xf32>
    %161 = arith.divf %159, %160 : vector<16x256xf32>
    %162 = arith.subf %117, %119 : vector<16x256xf32>
    %163 = arith.mulf %161, %162 : vector<16x256xf32>
    %164 = arith.addf %119, %163 : vector<16x256xf32>
    %cst_103 = arith.constant 2.000000e+00 : f32
    %165 = vector.broadcast %cst_103 : f32 to vector<16x256xf32>
    %166 = arith.mulf %165, %164 : vector<16x256xf32>
    %c0_104 = arith.constant 0 : index
    %c0_105 = arith.constant 0 : index
    %c0_106 = arith.constant 0 : index
    %167 = vector.load %arg16[%c0_104, %c0_105, %c0_106] : memref<1x16x256xf32, #tpu.memory_space<vmem>>, vector<1x16x256xf32>
    %168 = vector.shape_cast %167 : vector<1x16x256xf32> to vector<16x256xf32>
    %169 = vector.shape_cast %166 : vector<16x256xf32> to vector<1x16x256xf32>
    tpu.vector_store %arg16[%c0_104, %c0_105, %c0_106], %169 {strides = array<i32>} : memref<1x16x256xf32, #tpu.memory_space<vmem>>, vector<1x16x256xf32>,
    return
  }
  func.func @transform_0(%arg0: i32) -> (i32, i32, i32) {
    %c0_i32 = arith.constant 0 : i32
    %c0_i32_0 = arith.constant 0 : i32
    %c0_i32_1 = arith.constant 0 : i32
    return %arg0, %c0_i32, %c0_i32_0 : i32, i32, i32
  }
  func.func @transform_1(%arg0: i32) -> (i32, i32, i32) {
    %c0_i32 = arith.constant 0 : i32
    %c0_i32_0 = arith.constant 0 : i32
    %c0_i32_1 = arith.constant 0 : i32
    return %arg0, %c0_i32, %c0_i32_0 : i32, i32, i32
  }
  func.func @transform_2(%arg0: i32) -> (i32, i32) {
    %c0_i32 = arith.constant 0 : i32
    %c0_i32_0 = arith.constant 0 : i32
    %c0_i32_1 = arith.constant 0 : i32
    return %c0_i32, %c0_i32_0 : i32, i32
  }
  func.func @transform_3(%arg0: i32) -> (i32, i32) {
    %c0_i32 = arith.constant 0 : i32
    %c0_i32_0 = arith.constant 0 : i32
    %c0_i32_1 = arith.constant 0 : i32
    return %c0_i32, %c0_i32_0 : i32, i32
  }
  func.func @transform_4(%arg0: i32) -> (i32, i32) {
    %c0_i32 = arith.constant 0 : i32
    %c0_i32_0 = arith.constant 0 : i32
    %c0_i32_1 = arith.constant 0 : i32
    return %c0_i32, %c0_i32_0 : i32, i32
  }
  func.func @transform_5(%arg0: i32) -> (i32, i32) {
    %c0_i32 = arith.constant 0 : i32
    %c0_i32_0 = arith.constant 0 : i32
    %c0_i32_1 = arith.constant 0 : i32
    return %c0_i32, %c0_i32_0 : i32, i32
  }
  func.func @transform_6(%arg0: i32) -> (i32, i32) {
    %c0_i32 = arith.constant 0 : i32
    %c0_i32_0 = arith.constant 0 : i32
    %c0_i32_1 = arith.constant 0 : i32
    return %c0_i32, %c0_i32_0 : i32, i32
  }
  func.func @transform_7(%arg0: i32) -> (i32, i32) {
    %c0_i32 = arith.constant 0 : i32
    %c0_i32_0 = arith.constant 0 : i32
    %c0_i32_1 = arith.constant 0 : i32
    return %c0_i32, %c0_i32_0 : i32, i32
  }
  func.func @transform_8(%arg0: i32) -> (i32, i32) {
    %c0_i32 = arith.constant 0 : i32
    %c0_i32_0 = arith.constant 0 : i32
    %c0_i32_1 = arith.constant 0 : i32
    return %c0_i32, %c0_i32_0 : i32, i32
  }
  func.func @transform_9(%arg0: i32) -> (i32, i32) {
    %c0_i32 = arith.constant 0 : i32
    %c0_i32_0 = arith.constant 0 : i32
    %c0_i32_1 = arith.constant 0 : i32
    return %c0_i32, %c0_i32_0 : i32, i32
  }
  func.func @transform_10(%arg0: i32) -> (i32, i32) {
    %c0_i32 = arith.constant 0 : i32
    %c0_i32_0 = arith.constant 0 : i32
    %c0_i32_1 = arith.constant 0 : i32
    return %c0_i32, %c0_i32_0 : i32, i32
  }
  func.func @transform_11(%arg0: i32) -> (i32, i32) {
    %c0_i32 = arith.constant 0 : i32
    %c0_i32_0 = arith.constant 0 : i32
    %c0_i32_1 = arith.constant 0 : i32
    return %c0_i32, %c0_i32_0 : i32, i32
  }
  func.func @transform_12(%arg0: i32) -> (i32, i32) {
    %c0_i32 = arith.constant 0 : i32
    %c0_i32_0 = arith.constant 0 : i32
    %c0_i32_1 = arith.constant 0 : i32
    return %c0_i32, %c0_i32_0 : i32, i32
  }
  func.func @transform_13(%arg0: i32) -> (i32, i32) {
    %c0_i32 = arith.constant 0 : i32
    %c0_i32_0 = arith.constant 0 : i32
    %c0_i32_1 = arith.constant 0 : i32
    return %c0_i32, %c0_i32_0 : i32, i32
  }
  func.func @transform_14(%arg0: i32) -> (i32, i32) {
    %c0_i32 = arith.constant 0 : i32
    %c0_i32_0 = arith.constant 0 : i32
    %c0_i32_1 = arith.constant 0 : i32
    return %c0_i32, %c0_i32_0 : i32, i32
  }
  func.func @transform_15(%arg0: i32) -> (i32, i32, i32) {
    %c0_i32 = arith.constant 0 : i32
    %c0_i32_0 = arith.constant 0 : i32
    %c0_i32_1 = arith.constant 0 : i32
    return %arg0, %c0_i32, %c0_i32_0 : i32, i32, i32
  }
}

</mosaic_0001>

<bundles_post_ra>
// kernel: tpu_custom_call.1
= control target key start
LH: loop header
LB: loop body
LE: loop exit
PB: predicated region body
PF: predicated region fallthrough
CT: control target
= control target key end

     0   :  { %s1915_s0 = inlined_call_operand.vmem [shape: f32[2,8,256], index: 0, kind: input, shape index: {}]   ;;  %s1916_s1 = inlined_call_operand.vmem [shape: f32[2,16,256], index: 1, kind: input, shape index: {}]   ;;  %s1917_s2 = inlined_call_operand.vmem [shape: bf16[16,72], index: 2, kind: input, shape index: {}]   ;;  %s1918_s3 = inlined_call_operand.vmem [shape: f32[16,1], index: 3, kind: input, shape index: {}]   ;;  %s1919_s4 = inlined_call_operand.vmem [shape: f32[16,1], index: 4, kind: input, shape index: {}]   ;;  %s1920_s5 = inlined_call_operand.vmem [shape: bf16[4,16], index: 5, kind: input, shape index: {}]   ;;  %s1921_s6 = inlined_call_operand.vmem [shape: f32[4,1], index: 6, kind: input, shape index: {}]   ;;  %s1922_s7 = inlined_call_operand.vmem [shape: f32[4,1], index: 7, kind: input, shape index: {}]   ;;  %s1923_s8 = inlined_call_operand.vmem [shape: bf16[16,4], index: 8, kind: input, shape index: {}]   ;;  %s1924_s9 = inlined_call_operand.vmem [shape: f32[16,1], index: 9, kind: input, shape index: {}]   ;;  %s1925_s10 = inlined_call_operand.vmem [shape: f32[16,1], index: 10, kind: input, shape index: {}]   ;;  %s1926_s11 = inlined_call_operand.vmem [shape: f32[4,16], index: 11, kind: input, shape index: {}]   ;;  %s1927_s12 = inlined_call_operand.vmem [shape: f32[4,1], index: 12, kind: input, shape index: {}]   ;;  %s1928_s13 = inlined_call_operand.vmem [shape: f32[16,4], index: 13, kind: input, shape index: {}]   ;;  %s1929_s14 = inlined_call_operand.vmem [shape: f32[16,1], index: 14, kind: input, shape index: {}]   ;;  %s1930_s15 = inlined_call_operand.hbm [shape: f32[2,16,256], index: 15, kind: output, shape index: {}]  }
   0x1   :  { %1936 = sst [smem:[#allocation10_spill]] %s1915_s0 }
   0x2   :  { %20 = vsyncpa [#allocation4], 0 }
   0x3   :  { %22 = vsyncpa [#allocation4 + $0x1], 0  ;;  %s1607_s18 = smov 0   ;;  %s1609_s19 = smov 0  }
   0x4   :  { %s1611_s20 = smov 0   ;;  %s1613_s21 = smov 0  }
   0x5 LB: > { %1937 = sst [smem:[#allocation6_spill]] %s1507_s20  ;;  %s1628_s22 = sadd.s32 4294967295, %s1511_s21   ;;  %s1511_s21 = sphi %s1613_s21, %s1946_s21   ;;  %s1507_s20 = sphi %s1611_s20, %s1948_s20   ;;  %s1503_s19 = sphi %s1609_s19, %s1950_s19   ;;  %s1499_s18 = sphi %s1607_s18, %s1949_s18  }
   0x6   : > { %s1318_s23 = sadd.s32 4294967294, %s1511_s21   ;;  %s1632_s24 = sadd.s32 1, %s1511_s21  }
   0x7   : > { %1938 = sst [smem:[#allocation7_spill]] %s1632_s24  ;;  %s360_s25 = sadd.s32 1, %s1507_s20 }
   0x8   : > { %s357_s26 = ssub.s32 %s1511_s21, %s1632_s24  ;;  %p370_p0 = scmp.ne.s32.totalorder %s1507_s20, %s1503_s19 }
   0x9   : > { %p358_p1 = scmp.eq.s32.totalorder %s357_s26, 0  ;;  %p371_p2 = scmp.eq.s32.totalorder %s1628_s22, 1 }
   0xa   : > { %p376_p3 = scmp.ne.s32.totalorder %s1503_s19, %s1499_s18  ;;  %p377_p4 = scmp.eq.s32.totalorder %s1318_s23, 1 }
   0xb   : > { %s1643_s27 = scalar_select %p358_p1, %s1507_s20, %s360_s25  }
   0xc   : > { %p1645_p5 = por %p371_p2, %p370_p0  ;;  %p1649_p6 = por %p377_p4, %p376_p3 }
   0xd   : > { %1939 = sst [smem:[#allocation8_spill]] %s1643_s27  ;;  %p1321_p7 = scmp.ge.s32.totalorder %s1511_s21, 1 }
   0xe   : > { %s1941_s29 = scalar_select %p1649_p6, 1, 0 }
   0xf   : > { %p450_p8 = scmp.lt.s32.totalorder %s1511_s21, 3 }
  0x10   : > { %1942 = sst [smem:[#allocation9_spill]] %s1941_s29 }
  0x11   : > { %p451_p9 = pnand %p1321_p7, %p450_p8 }
  0x12   : > { %p503_p10 = scmp.lt.s32.totalorder (!%p451_p9), %s1628_s22, 1  ;;  %s1943_s0 = sld [smem:[#allocation10_spill]] (!%p451_p9) }
  0x13   : > { %454 = sbr.rel (%p451_p9) target bundleno = 1188 (0x4a4), region = 80  ;;  %s1514_s26 = smov (!%p451_p9), 111  }
  0x14   : > { %s1515_s27 = smov (!%p451_p9), 113   ;;  %s1516_s20 = smov (!%p451_p9), 112  }
  0x15   : > { %s1518_s17 = smov (!%p451_p9), 15   ;;  %s1519_s23 = smov (!%p451_p9), 1  }
  0x18   : > { %v1513_v0 = vmov 0.0   ;;  %s1665_s30 = scalar_select %p503_p10, %s1628_s22, 1  ;;  %v1521_v3 = vmov 0   ;;  %v797_v4 = vld [vmem:[%s1918_s3 + $0x8] sm:$0xff]  ;;  %v796_v5 = vld [vmem:[%s1918_s3] sm:$0xff]  ;;  %v514_v10 = vlaneseq  ;;  %vm699_vm1 = vcmask 908288  }
  0x19   : > { %558 = vst [vmem:[#allocation2 + $0x88] sm:$0xff] %v1513_v0  ;;  %541 = vst [vmem:[#allocation2] sm:$0xff] %v1513_v0  ;;  %785 = vmatprep.mubr.bf16.mxu0 %v1521_v3  ;;  %1420 = vset.pattern.permute.xlu1 %v1521_v3  ;;  %v812_v6 = vld [vmem:[%s1919_s4] sm:$0xff]  ;;  %v813_v7 = vld [vmem:[%s1919_s4 + $0x8] sm:$0xff]  ;;  %vm669_vm3 = vcmask 924672   ;;  %vm685_vm6 = vcmask 916480  }
  0x1a   : > { %543 = vst [vmem:[#allocation2 + $0x10] sm:$0xff] %v1513_v0  ;;  %545 = vst [vmem:[#allocation2 + $0x20] sm:$0xff] %v1513_v0  ;;  %s1347_s16 = sshll.u32 %s1665_s30, 4  ;;  %1419 = vset.pattern.permute.xlu0 %v1521_v3  ;;  %878 = vmatprep.mubr.bf16.mxu1 %v1521_v3  ;;  %v887_v8 = vld [vmem:[%s1921_s6] sm:$0xf]  ;;  %v515_v11 = vand.u32 127, %v514_v10 }
  0x1b   : > { %547 = vst [vmem:[#allocation2 + $0x30] sm:$0xff] %v1513_v0  ;;  %552 = vst [vmem:[#allocation2 + $0x58] sm:$0xff] %v1513_v0  ;;  %s507_s25 = scalar_lea.vmem %s1943_s0, %s1347_s16  ;;  %s1517_s16 = smov 127   ;;  %v895_v9 = vld [vmem:[%s1922_s7] sm:$0xf]  ;;  %vm653_vm7 = vcmask 1039360  }
  0x1c   : > { %554 = vst [vmem:[#allocation2 + $0x68] sm:$0xff] %v1513_v0  ;;  %556 = vst [vmem:[#allocation2 + $0x78] sm:$0xff] %v1513_v0  ;;  %v1671_v1 = vld [vmem:[%s507_s25] sm:$0xff]  ;;  %v1673_v2 = vld [vmem:[%s507_s25 + $0x8] sm:$0xff]  ;;  %v516_v12 = vadd.s32 128, %v515_v11  ;;  %v521_v14 = vand.u32 15, %v515_v11 }
  0x1d   : > { %695 = vrot.lane.b32.xlu0 %v1671_v1, %s1514_s26  ;;  %665 = vrot.lane.b32.xlu1 %v1671_v1, %s1515_s27  ;;  %vm746_vm8 = vcmask 1043456   ;;  %vm615_vm9 = vcmask 121856   ;;  %vm621_vm10 = vcmask 1047672   ;;  %vm632_vm11 = vcmask 7168   ;;  %s1348_s29 = sshll.u32 %s1665_s30, 5  ;;  %s1525_s30 = smov [#allocation3]  }
  0x1e   : > { %v528_v13 = vand.u32 15, %v516_v12  ;;  %v1719_v17 = vadd.s32 1, %v521_v14  ;;  %v1721_v18 = vadd.s32 4294967295, %v521_v14  ;;  %vm638_vm12 = vcmask 1047560  }
  0x1f   : > { %vm1523_vm13 = vmmov 1   ;;  %vm575_vm15 = vcmask 138240  }
  0x20   : > { %v1715_v15 = vadd.s32 1, %v528_v13  ;;  %v1717_v16 = vadd.s32 4294967295, %v528_v13  ;;  %vm605_vm4 = vcmp.lt.s32.totalorder %v1719_v17, 16  ;;  %vm563_vm5 = vcmp.ge.s32.totalorder %v1721_v18, 0 }
  0x21   : > { %697 = vrot.lane.b32.xlu0 %v1673_v2, %s1514_s26  ;;  %667 = vrot.lane.b32.xlu1 %v1673_v2, %s1515_s27  ;;  %s1520_s27 = smov 17   ;;  %vm1439_vm14 = vmpackc.low %vm1523_vm13, %vm563_vm5  ;;  %s1349_s26 = sshll.u32 %s1628_s22, 9 }
  0x22   : > { %vm606_vm0 = vcmp.lt.s32.totalorder %v1715_v15, 16  ;;  %vm564_vm2 = vcmp.ge.s32.totalorder %v1717_v16, 0 }
  0x25   : > { %681 = vrot.lane.b32.xlu0 %v1671_v1, %s1516_s20  ;;  %683 = vrot.lane.b32.xlu1 %v1673_v2, %s1516_s20  ;;  %s1934_s20 = smov 16  }
  0x29   : > { %651 = vrot.lane.b32.xlu1 %v1673_v2, %s1517_s16  ;;  %649 = vrot.lane.b32.xlu0 %v1671_v1, %s1517_s16  ;;  %s1868_s16 = scalar_lea.hbm %s1930_s15, %s1349_s26 }
  0x2d   : > { %613 = vrot.lane.b32.xlu1 %v1673_v2, %s1518_s17  ;;  %611 = vrot.lane.b32.xlu0 %v1671_v1, %s1518_s17  ;;  %s512_s17 = scalar_lea.vmem %s1916_s1, %s1348_s29 }
  0x31   : > { %630 = vrot.lane.b32.xlu1 %v1673_v2, %s1519_s23  ;;  %628 = vrot.lane.b32.xlu0 %v1671_v1, %s1519_s23  ;;  %s1455_s23 = sshll.u32 %s1525_s30, 4  ;;  %s1456_s23 = int_to_ptr.vmem [resolvable:$false] %s1455_s23 }
  0x35   : > { %573 = vrot.lane.b32.xlu1 %v1673_v2, %s1520_s27  ;;  %571 = vrot.lane.b32.xlu0 %v1671_v1, %s1520_s27  ;;  %s500_s27 = sand.u32 1, %s1503_s19  }
  0x36   : > { %s1322_s25 = sshll.u32 %s500_s27, 5  ;;  %s1874_s22 = scalar_lea.sflag [#allocation4], %s500_s27 }
  0x37   : > { %s502_s0 = scalar_lea.vmem [#allocation3], %s1322_s25  ;;  %s1457_s25 = scalar_lea.vmem %s1456_s23, 1024 }
  0x38   : > { %s1244_s24 = sshll.u32 %s502_s0, 4  ;;  %s1870_s24 = int_to_ptr.vmem [resolvable:$true] %s1244_s24 }
  0x39   : > { %590 = vrot.lane.b32.xlu1 %v1673_v2, %s1934_s20  ;;  %588 = vrot.lane.b32.xlu0 %v1671_v1, %s1934_s20  ;;  %p1458_p0 = scmp.lt.s32.totalorder %s1870_s24, %s1456_s23 }
  0x3d   : > { %805 = vperm.xlu1 %1420, %v797_v4   ;;  %800 = vperm.xlu0 %1419, %v796_v5  }
  0x41   : > { %816 = vperm.xlu1 %1420, %v812_v6   ;;  %821 = vperm.xlu0 %1419, %v813_v7   ;;  %v1421_v7 = vld [vmem:[%s1917_s2] sm:$0xff]  }
  0x45   : > { %890 = vperm.xlu1 %1420, %v887_v8   ;;  %898 = vperm.xlu0 %1419, %v895_v9  }
  0x8f   : > { %v696_v19 = vpop.permute.xlu0 %695  ;;  %v666_v20 = vpop.permute.xlu1 %665 }
  0x93   : > { %v698_v21 = vpop.permute.xlu0 %697  ;;  %v668_v22 = vpop.permute.xlu1 %667 }
  0x94   : > { %v700_v23 = vsel %vm699_vm1, %v696_v19, %v698_v21  ;;  %v704_v24 = vsel %vm606_vm0, %v698_v21, 0.0  ;;  %v670_v25 = vsel %vm669_vm3, %v666_v20, %v668_v22  ;;  %v674_v26 = vsel %vm564_vm2, %v668_v22, 0.0  ;;  %v1771_v20 = vld [vmem:[%s512_s17] sm:$0xff]  ;;  %v1773_v22 = vld [vmem:[%s512_s17 + $0x8] sm:$0xff] }
  0x95   : > { %v703_v27 = vsel %vm605_vm4, %v700_v23, 0.0  ;;  %706 = vst.msk [vmem:[#allocation2 + $0x88] sm:$0xff] %vm699_vm1, %v704_v24  ;;  %vm581_vm1 = vcmask 1047688  }
  0x96   : > { %676 = vst.msk [vmem:[#allocation2 + $0x68] sm:$0xff] %vm669_vm3, %v674_v26  ;;  %v733_v33 = vpack.c.bf16 %v703_v27, %v703_v27  ;;  %vm1442_vm3 = vmpackc.low %vm605_vm4, %vm1523_vm13 }
  0x97   : > { %v682_v28 = vpop.permute.xlu0 %681  ;;  %v684_v29 = vpop.permute.xlu1 %683 }
  0x98   : > { %v686_v30 = vsel %vm685_vm6, %v682_v28, %v684_v29  ;;  %690 = vst.msk [vmem:[#allocation2 + $0x78] sm:$0xff] %vm685_vm6, %v684_v29  ;;  %v748_v41 = vsel %vm746_vm8, %v733_v33, 0  ;;  %vm592_vm6 = vcmask 130048   ;;  %v1779_v28 = vld [vmem:[%s512_s17 + $0x10] sm:$0xff] }
  0x99   : > { %v1440_v50 = vpack.c.bf16 %v686_v30, %v670_v25 }
  0x9b   : > { %v652_v31 = vpop.permute.xlu1 %651  ;;  %v650_v32 = vpop.permute.xlu0 %649 }
  0x9c   : > { %v658_v34 = vsel %vm606_vm0, %v652_v31, 0.0  ;;  %v654_v35 = vsel %vm653_vm7, %v650_v32, %v652_v31  ;;  %v724_v36 = vld [vmem:[#allocation2 + $0x88] sm:$0xff]  ;;  %v1789_v32 = vld [vmem:[%s512_s17 + $0x18] sm:$0xff]  ;;  %s1451_s17 = scalar_lea.vmem %s1870_s24, 512 }
  0x9d   : > { %660 = vst.msk [vmem:[#allocation2 + $0x58] sm:$0xff] %vm653_vm7, %v658_v34  ;;  %v734_v37 = vpack.c.bf16 %v724_v36, %v724_v36  ;;  %v720_v38 = vld [vmem:[#allocation2 + $0x68] sm:$0xff]  ;;  %v1443_v57 = vpack.c.bf16 %v654_v35, %v1671_v1  ;;  %vm596_vm7 = vcmask 1047680   ;;  %p1452_p11 = scmp.ne.s32.totalorder %s1870_s24, %s1451_s17  ;;  %p1459_p1 = scmp.lt.s32.totalorder %s1457_s25, %s1451_s17 }
  0x9f   : > { %1328 = vmatprep.subr.msk.bf16.mxu0 %vm746_vm8, %v734_v37  ;;  %v614_v39 = vpop.permute.xlu1 %613  ;;  %v612_v40 = vpop.permute.xlu0 %611  ;;  %v722_v42 = vld [vmem:[#allocation2 + $0x78] sm:$0xff]  ;;  %p1453_p12 = pnand %p1452_p11, %p1645_p5  ;;  %p1460_p2 = por %p1459_p1, %p1458_p0 }
  0xa0   : > { %v616_v43 = vsel %vm615_vm9, %v612_v40, %v614_v39  ;;  %v619_v44 = vsel %vm605_vm4, %v612_v40, 0.0  ;;  %760 = vmatpush1.bf16.msra.mxu0 %v748_v41  ;;  %v732_v45 = vpack.c.bf16 %v722_v42, %v720_v38  ;;  %vm1445_vm9 = vmpackc.low %vm564_vm2, %vm606_vm0  ;;  %vm742_vm0 = vcmask 588800   ;;  %v842_v40 = vld [vmem:[%s1920_s5] sm:$0x3]  ;;  %v969_v41 = vld [vmem:[%s1924_s9 + $0x8] sm:$0xff] }
  0xa1   : > { %622 = vst.msk [vmem:[#allocation2 + $0x20] sm:$0xff] %vm621_vm10, %v619_v44  ;;  %vm1448_vm4 = vmpackc.low %vm1523_vm13, %vm564_vm2  ;;  %v968_v42 = vld [vmem:[%s1924_s9] sm:$0xff]  ;;  %v985_v44 = vld [vmem:[%s1925_s10 + $0x8] sm:$0xff]  ;;  %vm918_vm2 = vcmask 1041408   ;;  %vm1524_vm10 = vmmov 0   ;;  %p1454_p13 = pneg %p1453_p12 }
  0xa2   : > { %761 = vmatprep.subr.bf16.mxu0 %v732_v45 }
  0xa3   : > { %v631_v46 = vpop.permute.xlu1 %630  ;;  %v629_v47 = vpop.permute.xlu0 %628  ;;  %p1461_p3 = pnand %p1460_p2, %p1454_p13 }
  0xa4   : > { %v633_v48 = vsel %vm632_vm11, %v629_v47, %v631_v46  ;;  %v636_v49 = vsel %vm563_vm5, %v629_v47, 0.0  ;;  %1441 = vmatpush1.bf16.msk.msra.mxu0 %vm1439_vm14, %v1440_v50  ;;  %v718_v51 = vld [vmem:[#allocation2 + $0x58] sm:$0xff] }
  0xa5   : > { %639 = vst.msk [vmem:[#allocation2 + $0x30] sm:$0xff] %vm638_vm12, %v636_v49  ;;  %v730_v52 = vpack.c.bf16 %v718_v51, %v1673_v2  ;;  %v1446_v58 = vpack.c.bf16 %v633_v48, %v616_v43  ;;  %v984_v43 = vld [vmem:[%s1925_s10] sm:$0xff] }
  0xa7   : > { %763 = vmatprep.subr.bf16.mxu0 %v730_v52  ;;  %v574_v53 = vpop.permute.xlu1 %573  ;;  %v572_v54 = vpop.permute.xlu0 %571 }
  0xa8   : > { %v576_v55 = vsel %vm575_vm15, %v572_v54, %v574_v53  ;;  %v579_v56 = vsel %vm563_vm5, %v572_v54, 0.0  ;;  %1444 = vmatpush1.bf16.msk.msra.mxu0 %vm1442_vm3, %v1443_v57  ;;  %v711_v62 = vld [vmem:[#allocation2 + $0x20] sm:$0xff]  ;;  %vm914_vm5 = vcmask 31744  }
  0xa9   : > { %582 = vst.msk [vmem:[#allocation2] sm:$0xff] %vm581_vm1, %v579_v56  ;;  %1447 = vmatprep.subr.msk.bf16.mxu0 %vm1445_vm9, %v1446_v58 }
  0xab   : > { %v591_v59 = vpop.permute.xlu1 %590  ;;  %v589_v60 = vpop.permute.xlu0 %588 }
  0xac   : > { %v593_v61 = vsel %vm592_vm6, %v589_v60, %v591_v59  ;;  %597 = vst.msk [vmem:[#allocation2 + $0x10] sm:$0xff] %vm596_vm7, %v589_v60  ;;  %v713_v63 = vld [vmem:[#allocation2 + $0x30] sm:$0xff]  ;;  %v1422_v60 = vld [vmem:[%s1923_s8] sm:$0xff]  }
  0xad   : > { %v727_v1 = vpack.c.bf16 %v713_v63, %v711_v62  ;;  %v1449_v2 = vpack.c.bf16 %v593_v61, %v576_v55 }
  0xaf   : > { %766 = vmatpush1.bf16.msra.mxu0 %v727_v1  ;;  %v1008_v1 = vld [vmem:[%s1926_s11] sm:$0xf] }
  0xb0   : > { %1450 = vmatprep.subr.msk.bf16.mxu0 %vm1448_vm4, %v1449_v2  ;;  %v707_v4 = vld [vmem:[#allocation2] sm:$0xff] }
  0xb1   : > { %v1084_v2 = vld [vmem:[%s1928_s13] sm:$0xff] }
  0xb3   : > { %v709_v5 = vld [vmem:[#allocation2 + $0x10] sm:$0xff] }
  0xb4   : > { %v725_v6 = vpack.c.bf16 %v709_v5, %v707_v4 }
  0xb6   : > { %768 = vmatpush1.bf16.msra.mxu0 %v725_v6 }
  0xb8   : > { %v806_v8 = vpop.permute.xlu1 %805  ;;  %v801_v9 = vpop.permute.xlu0 %800 }
  0xb9   : > { %1329 = vmatmul.mubr.msk.bf16.vlgmr.msra.gmra.mxu0 %vm742_vm0, %v1421_v7 }
  0xbc   : > { %v817_v12 = vpop.permute.xlu1 %816  ;;  %v822_v21 = vpop.permute.xlu0 %821 }
  0xc0   : > { %v899_v47 = vpop.permute.xlu0 %898 }
 0x179   : > { %v787_v10 = vpop.f32.mrf.mxu0 }
 0x17a   : > { %v808_v11 = vmul.f32 %v801_v9, %v787_v10 }
 0x17b   : > { %v789_v13 = vpop.f32.mrf.mxu0 }
 0x17c   : > { %v1766_v14 = vadd.f32 %v817_v12, %v808_v11  ;;  %v809_v15 = vmul.f32 %v801_v9, %v789_v13  ;;  %v1087_v13 = vld [vmem:[%s1929_s14 + $0x8] sm:$0xff] }
 0x17d   : > { %v791_v16 = vpop.f32.mrf.mxu0 }
 0x17e   : > { %v828_v17 = vmax.f32 %v1766_v14, 0.0  ;;  %v1769_v18 = vadd.f32 %v817_v12, %v809_v15  ;;  %v810_v19 = vmul.f32 %v806_v8, %v791_v16  ;;  %v1085_v12 = vld [vmem:[%s1928_s13 + $0x8] sm:$0xff]  ;;  %v1086_v16 = vld [vmem:[%s1929_s14] sm:$0xff] }
 0x17f   : > { %v793_v23 = vpop.f32.mrf.mxu0 }
 0x180   : > { %v829_v24 = vmax.f32 %v1769_v18, 0.0  ;;  %v1776_v25 = vadd.f32 %v822_v21, %v810_v19  ;;  %v811_v26 = vmul.f32 %v806_v8, %v793_v23  ;;  %v836_v30 = vadd.f32 %v1771_v20, %v828_v17 }
 0x182   : > { %v830_v27 = vmax.f32 %v1776_v25, 0.0  ;;  %v1781_v29 = vadd.f32 %v822_v21, %v811_v26  ;;  %v837_v31 = vadd.f32 %v1773_v22, %v829_v24  ;;  %v1211_v25 = vsub.f32 %v829_v24, %v1773_v22 }
 0x184   : > { %v831_v33 = vmax.f32 %v1781_v29, 0.0  ;;  %v1000_v34 = vadd.f32 %v837_v31, %v836_v30  ;;  %v838_v35 = vadd.f32 %v1779_v28, %v830_v27 }
 0x186   : > { %1001 = vadd.xlane.f32.xlu0 %v1000_v34  ;;  %v839_v36 = vadd.f32 %v1789_v32, %v831_v33  ;;  %v840_v39 = vpack.c.bf16 %v838_v35, %v836_v30 }
 0x188   : > { %v841_v37 = vpack.c.bf16 %v839_v36, %v837_v31  ;;  %v1003_v38 = vadd.f32 %v839_v36, %v838_v35 }
 0x18a   : > { %860 = vmatprep.subr.bf16.mxu1 %v841_v37  ;;  %1004 = vadd.xlane.f32.xlu1 %v1003_v38 }
 0x18b   : > { %861 = vmatpush1.bf16.msra.mxu1 %v840_v39 }
 0x18e   : > { %1330 = vmatmul.mubr.msk.bf16.vlgmr.msra.gmra.mxu1 %vm592_vm6, %v842_v40 }
 0x18f   : > { %957 = vmatprep.mubr.bf16.mxu1 %v1521_v3  ;;  %v891_v3 = vpop.permute.xlu1 %890 }
 0x19b   : > { %977 = vperm.xlu1 %1420, %v969_v41  }
 0x19c   : > { %972 = vperm.xlu0 %1419, %v968_v42  }
 0x19f   : > { %988 = vperm.xlu1 %1420, %v984_v43  }
 0x1a0   : > { %993 = vperm.xlu0 %1419, %v985_v44  }
 0x20f   : > { %v1002_v61 = vpop.xlane.xlu0 %1001 }
 0x210   : > { %v1006_v63 = vmul.f32 0.00390625, %v1002_v61 }
 0x213   : > { %v1005_v58 = vpop.xlane.xlu1 %1004 }
 0x214   : > { %v1007_v62 = vmul.f32 0.00390625, %v1005_v58 }
 0x217   : > { %v973_v26 = vpop.permute.xlu0 %972  ;;  %v978_v30 = vpop.permute.xlu1 %977 }
 0x21b   : > { %v994_v35 = vpop.permute.xlu0 %993  ;;  %v989_v38 = vpop.permute.xlu1 %988 }
 0x24e   : > { %v880_v45 = vpop.f32.mrf.mxu1 }
 0x24f   : > { %v893_v46 = vmul.f32 %v891_v3, %v880_v45 }
 0x250   : > { %v882_v48 = vpop.f32.mrf.mxu1 }
 0x251   : > { %v901_v49 = vadd.f32 %v899_v47, %v893_v46  ;;  %v894_v50 = vmul.f32 %v891_v3, %v882_v48 }
 0x252   : > { %v884_v51 = vpop.f32.mrf.mxu1 }
 0x253   : > { %v903_v52 = vmax.f32 %v901_v49, 0.0  ;;  %v902_v53 = vadd.f32 %v899_v47, %v894_v50 }
 0x254   : > { %v885_v54 = vpop.f32.mrf.mxu1 }
 0x255   : > { %v907_v55 = vpack.c.bf16 %v903_v52, %v903_v52  ;;  %v904_v56 = vmax.f32 %v902_v53, 0.0 }
 0x257   : > { %v908_v57 = vpack.c.bf16 %v904_v56, %v904_v56  ;;  %v920_v59 = vsel %vm918_vm2, %v907_v55, 0 }
 0x259   : > { %1332 = vmatprep.subr.msk.bf16.mxu1 %vm918_vm2, %v908_v57 }
 0x25a   : > { %940 = vmatpush1.bf16.msra.mxu1 %v920_v59 }
 0x25b   : > { %1356 = vmatprep.subr.mxu1 %v1513_v0 }
 0x25d   : > { %1333 = vmatmul.mubr.msk.bf16.vlgmr.msra.gmra.mxu1 %vm914_vm5, %v1422_v60  ;;  %v1212_v60 = vsub.f32 %v830_v27, %v1779_v28 }
 0x25e   : > { %1357 = vmatpush3.msra.mxu1 %v1007_v62  ;;  %1360 = vmatprep.mubr.msk.f32.mxu1 %vm1524_vm10, %v1513_v0  ;;  %v1213_v62 = vsub.f32 %v831_v33, %v1789_v32 }
 0x25f   : > { %1358 = vmatprep.subr.mxu1 %v1513_v0  ;;  %v1009_v0 = vld [vmem:[%s1927_s12] sm:$0xf] }
 0x260   : > { %1359 = vmatpush3.msra.mxu1 %v1006_v63 }
 0x265   : > { %1361 = vmatmul.mubr.msk.f32.vlgmr.msra.gmra.mxu1 %vm592_vm6, %v1008_v1  ;;  %v1210_v1 = vsub.f32 %v828_v17, %v1771_v20 }
 0x266   : > { %1365 = vmatprep.mubr.msk.f32.mxu1 %vm914_vm5, %v1084_v2 }
 0x31d   : > { %v959_v4 = vpop.f32.mrf.mxu1 }
 0x31e   : > { %v980_v36 = vmul.f32 %v973_v26, %v959_v4 }
 0x31f   : > { %v961_v5 = vpop.f32.mrf.mxu1 }
 0x320   : > { %v981_v37 = vmul.f32 %v973_v26, %v961_v5  ;;  %v996_v44 = vadd.f32 %v989_v38, %v980_v36 }
 0x321   : > { %v963_v6 = vpop.f32.mrf.mxu1 }
 0x322   : > { %v982_v31 = vmul.f32 %v978_v30, %v963_v6  ;;  %v997_v3 = vadd.f32 %v989_v38, %v981_v37 }
 0x323   : > { %v965_v7 = vpop.f32.mrf.mxu1 }
 0x324   : > { %v983_v34 = vmul.f32 %v978_v30, %v965_v7  ;;  %v998_v39 = vadd.f32 %v994_v35, %v982_v31 }
 0x325   : > { %v1079_v8 = vpop.f32.mrf.mxu1 }
 0x326   : > { %v1080_v9 = vadd.f32 %v1079_v8, %v1009_v0  ;;  %v999_v40 = vadd.f32 %v994_v35, %v983_v34 }
 0x327   : > { %v1362_v10 = vpop.f32.mrf.mxu1 }
 0x328   : > { %v1083_v11 = vmax.f32 %v1080_v9, 0.0 }
 0x32a   : > { %1363 = vmatprep.subr.msk.mxu1 %vm746_vm8, %v1083_v11 }
 0x32b   : > { %1364 = vmatpush3.msk.msra.mxu1 %vm746_vm8, %v1083_v11 }
 0x32c   : > { %1366 = vmatmul.mubr.msk.f32.vlgmr.msra.gmra.mxu1 %vm914_vm5, %v1085_v12 }
 0x3ec   : > { %v1367_v15 = vpop.f32.mrf.mxu1 }
 0x3ed   : > { %v1169_v19 = vadd.f32 %v1367_v15, %v1087_v13 }
 0x3ee   : > { %v1163_v21 = vpop.f32.mrf.mxu1 }
 0x3ef   : > { %v1164_v23 = vadd.f32 %v1163_v21, %v1086_v16  ;;  %1179 = vperm.xlu0 %1419, %v1169_v19  }
 0x3f1   : > { %1174 = vperm.xlu1 %1420, %v1164_v23  }
 0x46a   : > { %v1180_v41 = vpop.permute.xlu0 %1179 }
 0x46b   : > { %v1184_v42 = vadd.f32 %v1180_v41, %v998_v39  ;;  %v1185_v43 = vadd.f32 %v1180_v41, %v999_v40 }
 0x46c   : > { %v1175_v45 = vpop.permute.xlu1 %1174 }
 0x46d   : > { %v1340_v46 = vmul.f32 -1.442695, %v1184_v42  ;;  %v1341_v47 = vmul.f32 -1.442695, %v1185_v43  ;;  %v1182_v48 = vadd.f32 %v1175_v45, %v996_v44  ;;  %v1183_v49 = vadd.f32 %v1175_v45, %v997_v3 }
 0x46f   : > { %1423 = vpow2.f32 %v1340_v46  ;;  %v1338_v50 = vmul.f32 -1.442695, %v1182_v48  ;;  %v1339_v51 = vmul.f32 -1.442695, %v1183_v49 }
 0x470   : > { %1425 = vpow2.f32 %v1341_v47 }
 0x471   : > { %1427 = vpow2.f32 %v1338_v50 }
 0x472   : > { %1429 = vpow2.f32 %v1339_v51 }
 0x47c   : > { %v1424_v52 = vpop.eup %1423 }
 0x47d   : > { %v1426_v53 = vpop.eup %1425  ;;  %v1200_v54 = vadd.f32 1.0, %v1424_v52 }
 0x47e   : > { %v1428_v55 = vpop.eup %1427  ;;  %v1201_v56 = vadd.f32 1.0, %v1426_v53 }
 0x47f   : > { %v1430_v57 = vpop.eup %1429  ;;  %1431 = vrcp.f32 %v1200_v54  ;;  %v1198_v58 = vadd.f32 1.0, %v1428_v55 }
 0x480   : > { %1433 = vrcp.f32 %v1201_v56  ;;  %v1199_v59 = vadd.f32 1.0, %v1430_v57 }
 0x481   : > { %1435 = vrcp.f32 %v1198_v58 }
 0x482   : > { %1437 = vrcp.f32 %v1199_v59 }
 0x48c   : > { %v1432_v61 = vpop.eup %1431 }
 0x48d   : > { %v1434_v63 = vpop.eup %1433  ;;  %v1216_v2 = vmul.f32 %v1432_v61, %v1212_v60 }
 0x48e   : > { %v1436_v4 = vpop.eup %1435  ;;  %v1217_v5 = vmul.f32 %v1434_v63, %v1213_v62 }
 0x48f   : > { %v1438_v27 = vpop.eup %1437  ;;  %v1220_v6 = vadd.f32 %v1216_v2, %v1779_v28  ;;  %v1214_v7 = vmul.f32 %v1436_v4, %v1210_v1 }
 0x490   : > { %v1221_v0 = vadd.f32 %v1217_v5, %v1789_v32  ;;  %v1215_v29 = vmul.f32 %v1438_v27, %v1211_v25 }
 0x491   : > { %v1218_v33 = vadd.f32 %v1214_v7, %v1771_v20  ;;  %v1224_v14 = vmul.f32 2.0, %v1220_v6 }
 0x492   : > { %v1219_v17 = vadd.f32 %v1215_v29, %v1773_v22  ;;  %v1225_v18 = vmul.f32 2.0, %v1221_v0 }
 0x493   : > { %v1222_v24 = vmul.f32 2.0, %v1218_v33  ;;  %1228 = vst [vmem:[%s502_s0 + $0x10] sm:$0xff] %v1224_v14 }
 0x494   : > { %v1223_v28 = vmul.f32 2.0, %v1219_v17  ;;  %1229 = vst [vmem:[%s502_s0 + $0x18] sm:$0xff] %v1225_v18 }
 0x495   : > { %1226 = vst [vmem:[%s502_s0] sm:$0xff] %v1222_v24 }
 0x496   : > { %1227 = vst [vmem:[%s502_s0 + $0x8] sm:$0xff] %v1223_v28 }
 0x497   : > { %1464 = shalt.err (!%p1461_p3)
}
 0x498   : > { %s1465_s27 = scalar_lea.hbm %s1868_s16, 512  ;;  %s1469_s29 = scalar_lea.hbm %s1930_s15, 1024 }
 0x499   : > { %p1466_p4 = scmp.ne.s32.totalorder %s1868_s16, %s1465_s27  ;;  %p1470_p9 = scmp.lt.s32.totalorder %s1868_s16, %s1930_s15 }
 0x49a   : > { %p1471_p10 = scmp.lt.s32.totalorder %s1469_s29, %s1465_s27 }
 0x49b   : > { %p1467_p7 = pnand %p1466_p4, %p1645_p5 }
 0x49c   : > { %p1472_p11 = por %p1471_p10, %p1470_p9 }
 0x49d   : > { %p1468_p8 = pneg %p1467_p7 }
 0x49f   : > { %p1473_p12 = pnand %p1472_p11, %p1468_p8 }
 0x4a1   : > { %1476 = shalt.err (!%p1473_p12)
}
 0x4a2   : > { %s1526_s17 = smov 256   ;;  %s1944_s23 = smov 16  }
 0x4a3   : > { %1368 = dma.vmem_to_hbm [thread:$0]  (%p1645_p5), %s1870_s24, 512, %s1868_s16, %s1874_s22, %s1526_s17, %s1526_s17, %s1944_s23  }
 0x4a4 PF: > { %p1374_p13 = scmp.ge.s32.totalorder %s1511_s21, 2  ;;  %s1259_s26 = sand.u32 1, %s1499_s18  }
 0x4a5   : > { %s1260_s27 = scalar_lea.sflag [#allocation4], %s1259_s26 }
 0x4a6   : > { %p1371_p0 = pnand %p1374_p13, %p1649_p6 }
 0x4a8   : > { %p1372_p1 = pneg %p1371_p0 }
 0x4aa   : > { %1494 = dma.done.wait (%p1372_p1), %s1260_s27, 512  }
 0x4ab   : > { %1496 = vsyncadd (%p1372_p1), %s1260_s27, 4294966784  ;;  %s1946_s21 = sld [smem:[#allocation7_spill]]  ;;  %s1949_s18 = smov %s1503_s19 }
 0x4ac   : > { %s1947_s28 = sld [smem:[#allocation6_spill]] }
 0x4ad   : > { %s1948_s20 = sld [smem:[#allocation8_spill]] }
 0x4b1   : > { %p25_p2 = scmp.ge.s32.totalorder %s1946_s21, 4  }
 0x4b2   : > { %s1950_s19 = smov %s1947_s28 }
 0x4b3   :  { %27 = sbr.rel (!%p25_p2) target bundleno = 5 (0x5), region = 118 }
 0x4b8   :  { %1265 = vsyncpa [#allocation4], 1 }
 0x4b9   :  { %1267 = vsyncpa [#allocation4 + $0x1], 1 }

</bundles_post_ra>
